<compile_context>
chip_gen: v7x
topology: tpu7x:2x2x1
jax: 0.10.0
libtpu: 0.0.40
codegen_flags: <defaults>
</compile_context>

<pallas_src>
import jax
import jax.numpy as jnp
from jax.experimental import pallas as pl
from jax.experimental.pallas import tpu as pltpu


def _lstm_attentive_kernel(
    xh1_ref,     # (B, E+H+1)   [inputs | hx | 1]  (trailing ones column pairs with the bias row of W1)
    cx_ref,      # (B, H)
    feat_ref,    # (B, T, H)
    w1_ref,      # (E+H+1, 5H)  fused [i | f | o | sentinel | g] weights, last row = bias
    ws_ref,      # (3H+8, H)    packed constants: w_ht | w_st | w_v | w_av | w_as | b_ht | b_st | b_v | b_av | b_as | pad
    hy_ref,      # (B, H)
    cy_ref,      # (B, H)
):
    f32 = jnp.float32
    cx = cx_ref[...]
    feat = feat_ref[...]
    B, T, H = feat.shape

    # -------- stage 1: fused LSTM gates + sentinel gate (one MXU call, bias folded) --------
    pre = jnp.dot(xh1_ref[...], w1_ref[...], preferred_element_type=f32)   # (B, 5H)
    sig = jax.nn.sigmoid(pre[:, :4 * H])     # ONE sigmoid over the first, lane-aligned 4H columns
    g_g = jnp.tanh(pre[:, 4 * H:])           # ONE tanh over the trailing H columns (starts at lane 128)
    i_g = sig[:, 0 * H:1 * H]
    f_g = sig[:, 1 * H:2 * H]
    o_g = sig[:, 2 * H:3 * H]
    s_gate = sig[:, 3 * H:4 * H]

    cy = f_g * cx + i_g * g_g
    tanh_cy = jnp.tanh(cy)
    hy = o_g * tanh_cy                       # (B, H)
    sentinel = s_gate * tanh_cy              # (B, H)

    # -------- packed constants (static, lane-0-aligned slices of the slab) --------
    w_ht = ws_ref[0 * H:1 * H, :]
    w_st = ws_ref[1 * H:2 * H, :]
    w_v  = ws_ref[2 * H:3 * H, :]
    w_av = ws_ref[3 * H + 0:3 * H + 1, :]    # (1, H)
    w_as = ws_ref[3 * H + 1:3 * H + 2, :]    # (1, H)
    b_ht = ws_ref[3 * H + 2:3 * H + 3, :]    # (1, H)
    b_st = ws_ref[3 * H + 3:3 * H + 4, :]    # (1, H)
    b_v  = ws_ref[3 * H + 4:3 * H + 5, :]    # (1, H)
    b_av = ws_ref[3 * H + 5:3 * H + 6, 0:T]  # (1, T)  scalar replicated across lanes at pack time
    b_as = ws_ref[3 * H + 6:3 * H + 7, 0:1]  # (1, 1)

    # -------- stage 2: two small independent matmuls (block-diag fusion reverted) --------
    h_t = jnp.dot(hy, w_ht, preferred_element_type=f32) + b_ht        # (B, H)
    s_t = jnp.dot(sentinel, w_st, preferred_element_type=f32) + b_st  # (B, H)

    # -------- v_transform (dropout = eval identity) + z_t / st_t --------
    feat2d = feat.reshape(B * T, H)          # leading-dim collapse; lane dim unchanged (re-tiling only)
    v2d = jnp.tanh(jnp.dot(feat2d, w_v, preferred_element_type=f32) + b_v)
    z_t = jnp.tanh(v2d.reshape(B, T, H) + h_t[:, None, :])            # (B, T, H)
    st_t = jnp.tanh(h_t + s_t)                                        # (B, H)

    # -------- attention logits --------
    base = jnp.sum(z_t * w_av[None, :, :], axis=-1) + b_av            # (B, T)
    sent_logit = jnp.sum(st_t * w_as, axis=-1, keepdims=True) + b_as  # (B, 1)

    # -------- split softmax over T+1 (no concat/slice relayout of the logits) --------
    m = jnp.maximum(jnp.max(base, axis=-1, keepdims=True), sent_logit)   # (B, 1)
    e_base = jnp.exp(base - m)                                           # (B, T)
    e_sent = jnp.exp(sent_logit - m)                                     # (B, 1)
    denom = jnp.sum(e_base, axis=-1, keepdims=True) + e_sent
    inv0 = pl.reciprocal(denom, approx=True)          # EUP vrcp slot
    inv = inv0 * (2.0 - denom * inv0)                 # one Newton step -> ~exact f32
    attn_vis = e_base * inv                           # (B, T)
    beta = e_sent * inv                               # (B, 1)

    # bmm(attn, [features; sentinel]) == sum_t attn_t * feat_t + beta * sentinel
    visual_cy = jnp.sum(attn_vis[:, :, None] * feat, axis=1) + beta * sentinel   # (B, H)
    # NOTE: beta*sentinel is intentionally counted twice (inside visual_cy via the
    # bmm with features_with_sentinel AND explicitly below) — matches the PyTorch forward.
    cy_hat = beta * sentinel + (1.0 - beta) * visual_cy

    hy_ref[...] = hy
    cy_ref[...] = cy_hat


def lstm_attentive_pallas(inputs, hx, cx, features, packed):
    B, H = hx.shape
    T = features.shape[1]
    # [x | hx | 1]: ones column pairs with the bias row folded into W1.
    xh1 = jnp.concatenate([inputs, hx, jnp.ones((B, 1), jnp.float32)], axis=1)
    args = (xh1, cx, features, packed["W1"], packed["WSLAB"])

    vmem = pl.BlockSpec(memory_space=pltpu.MemorySpace.VMEM)
    nbytes = 4 * (xh1.size + cx.size + features.size
                  + packed["W1"].size + packed["WSLAB"].size + 2 * B * H)
    flops = 2 * B * (xh1.shape[1] * 5 * H + 2 * H * H + T * H * H) + 16 * B * T * H
    transcendentals = B * (4 * H + 2 * H + 2 * H) + 2 * B * T * H + B * T + 3 * B

    hy, cy_hat = pl.pallas_call(
        _lstm_attentive_kernel,
        out_shape=(jax.ShapeDtypeStruct((B, H), jnp.float32),
                   jax.ShapeDtypeStruct((B, H), jnp.float32)),
        in_specs=[vmem] * len(args),
        out_specs=(vmem, vmem),
        cost_estimate=pl.CostEstimate(flops=flops,
                                      transcendentals=transcendentals,
                                      bytes_accessed=nbytes),
    )(*args)
    return hy, cy_hat


# ---------------- parameter packing (done once, outside the step) ----------------
def pack_params(p):
    H = p["w_ht_t"].shape[0]
    E = p["w_ih_t"].shape[0]
    # sentinel_igate is applied to `inputs`, so the module only makes sense when E == H.
    assert E == H, "LSTMAttentive requires embed_size == hidden_size"
    assert H % 8 == 0, "hidden_size must be a multiple of 8 for the packed constant slab"
    f32 = jnp.float32

    # torch LSTMCell column order is [i | f | g | o]
    wi, wh, bl = p["w_ih_t"], p["w_hh_t"], p["b_lstm"]
    wi_i, wi_f, wi_g, wi_o = (wi[:, k * H:(k + 1) * H] for k in range(4))
    wh_i, wh_f, wh_g, wh_o = (wh[:, k * H:(k + 1) * H] for k in range(4))
    b_i, b_f, b_g, b_o = (bl[:, k * H:(k + 1) * H] for k in range(4))

    # Stage-1 fused weight: [x | hx | 1] @ W1 -> [i | f | o | sentinel | g]
    # (sigmoid gates contiguous in the first 4H lanes, tanh gate last,
    #  trailing row = folded bias; sentinel bias = b_si + b_sh).
    W1 = jnp.concatenate([
        jnp.concatenate([wi_i, wi_f, wi_o, p["w_si_t"], wi_g], axis=1),
        jnp.concatenate([wh_i, wh_f, wh_o, p["w_sh_t"], wh_g], axis=1),
        jnp.concatenate([b_i, b_f, b_o, p["b_si"] + p["b_sh"], b_g], axis=1),
    ], axis=0).astype(f32)                                     # (E+H+1, 5H)

    # Lane-aligned constant slab: every segment starts at lane 0; big blocks sit
    # at 8-aligned sublane offsets; scalar biases are replicated across H lanes.
    ones_row = jnp.ones((1, H), f32)
    wslab = jnp.concatenate([
        p["w_ht_t"], p["w_st_t"], p["w_v_t"],        # rows 0:3H
        p["w_av_row"], p["w_as_col"].T,              # rows 3H, 3H+1
        p["b_ht"], p["b_st"], p["b_v"],              # rows 3H+2 .. 3H+4
        p["b_av"][0, 0] * ones_row,                  # row 3H+5
        p["b_as"][0, 0] * ones_row,                  # row 3H+6
    ], axis=0).astype(f32)                                     # (3H+7, H)
    pad = (-wslab.shape[0]) % 8
    if pad:
        wslab = jnp.concatenate([wslab, jnp.zeros((pad, H), f32)], axis=0)

    return {"W1": W1, "WSLAB": wslab}


# ---------------- pure-JAX reference (mirrors the PyTorch forward) ----------------
def lstm_attentive_ref(inputs, hx, cx, features, p):
    B, T, H = features.shape
    gates = inputs @ p["w_ih_t"] + hx @ p["w_hh_t"] + p["b_lstm"]
    i = jax.nn.sigmoid(gates[:, 0 * H:1 * H])
    f = jax.nn.sigmoid(gates[:, 1 * H:2 * H])
    g = jnp.tanh(gates[:, 2 * H:3 * H])
    o = jax.nn.sigmoid(gates[:, 3 * H:4 * H])
    cy = f * cx + i * g
    hy = o * jnp.tanh(cy)

    sgate = jax.nn.sigmoid(inputs @ p["w_si_t"] + p["b_si"] + hx @ p["w_sh_t"] + p["b_sh"])
    sentinel = sgate * jnp.tanh(cy)

    h_t = hy @ p["w_ht_t"] + p["b_ht"]
    s_t = sentinel @ p["w_st_t"] + p["b_st"]
    v = jnp.tanh(features.reshape(B * T, H) @ p["w_v_t"] + p["b_v"]).reshape(B, T, H)
    z_t = jnp.tanh(v + h_t[:, None, :])
    st_t = jnp.tanh(h_t + s_t)

    base = jnp.sum(z_t * p["w_av_row"][None, :, :], axis=-1) + p["b_av"][0, 0]
    sent_att = st_t @ p["w_as_col"] + p["b_as"]
    logits = jnp.concatenate([base, sent_att], axis=1)
    attn = jax.nn.softmax(logits, axis=1)

    fws = jnp.concatenate([features, sentinel[:, None, :]], axis=1)
    visual_cy = jnp.einsum("bt,bth->bh", attn, fws)
    beta = attn[:, -1:]
    cy_hat = beta * sentinel + (1.0 - beta) * visual_cy
    return hy, cy_hat


# ---------------- deterministic parameter construction ----------------
def make_params(key, embed_size, hidden_size):
    H, E = hidden_size, embed_size
    keys = jax.random.split(key, 16)

    def kaiming_t(k, fan_in, fan_out):
        # torch kaiming_uniform (fan_in mode, a=0) bound; returned as (in, out)
        bound = (6.0 / fan_in) ** 0.5
        return jax.random.uniform(k, (fan_in, fan_out), jnp.float32, -bound, bound)

    lstm_bound = 1.0 / (H ** 0.5)

    def lstm_u(k, shape):
        return jax.random.uniform(k, shape, jnp.float32, -lstm_bound, lstm_bound)

    params = {
        # LSTMCell (default torch init, biases NOT zeroed by _initialize_weights)
        "w_ih_t": lstm_u(keys[0], (E, 4 * H)),
        "w_hh_t": lstm_u(keys[1], (H, 4 * H)),
        "b_lstm": lstm_u(keys[2], (1, 4 * H)) + lstm_u(keys[3], (1, 4 * H)),
        # Linear layers: kaiming_uniform weights, zero biases
        "w_si_t": kaiming_t(keys[4], H, H), "b_si": jnp.zeros((1, H), jnp.float32),
        "w_sh_t": kaiming_t(keys[5], H, H), "b_sh": jnp.zeros((1, H), jnp.float32),
        "w_st_t": kaiming_t(keys[6], H, H), "b_st": jnp.zeros((1, H), jnp.float32),
        "w_ht_t": kaiming_t(keys[7], H, H), "b_ht": jnp.zeros((1, H), jnp.float32),
        "w_v_t": kaiming_t(keys[8], H, H), "b_v": jnp.zeros((1, H), jnp.float32),
        # attn_visual: weight (1, H) in torch -> row vector here
        "w_av_row": kaiming_t(keys[9], H, 1).T, "b_av": jnp.zeros((1, 1), jnp.float32),
        # attn_sentinel: weight (1, H) in torch -> column vector here
        "w_as_col": kaiming_t(keys[10], H, 1), "b_as": jnp.zeros((1, 1), jnp.float32),
    }
    return params


if __name__ == "__main__":
    B, T, E, H = 2, 8, 32, 32  # sentinel_igate(inputs) requires embed_size == hidden_size

    key = jax.random.PRNGKey(0)
    k_in, k_hx, k_cx, k_feat, k_par = jax.random.split(key, 5)

    inputs = jax.random.normal(k_in, (B, E), jnp.float32)
    hx = jax.random.normal(k_hx, (B, H), jnp.float32)
    cx = jax.random.normal(k_cx, (B, H), jnp.float32)
    features = jax.random.normal(k_feat, (B, T, H), jnp.float32)

    raw_params = make_params(k_par, E, H)
    packed_params = pack_params(raw_params)

    hy, cy_hat = jax.jit(lstm_attentive_pallas)(inputs, hx, cx, features, packed_params)
    jax.block_until_ready((hy, cy_hat))

    hy_ref, cy_ref = lstm_attentive_ref(inputs, hx, cx, features, raw_params)
    assert jnp.allclose(hy, hy_ref, atol=1e-4, rtol=1e-4), "hy mismatch"
    assert jnp.allclose(cy_hat, cy_ref, atol=1e-4, rtol=1e-4), "cy_hat mismatch"

    print("KERNEL_OK")
</pallas_src>

<mosaic_0001>
module attributes {stable_mosaic.version = 11 : i64} {
  func.func @_lstm_attentive_kernel(%arg0: memref<2x65xf32, #tpu.memory_space<vmem>>, %arg1: memref<2x32xf32, #tpu.memory_space<vmem>>, %arg2: memref<2x8x32xf32, #tpu.memory_space<vmem>>, %arg3: memref<65x160xf32, #tpu.memory_space<vmem>>, %arg4: memref<104x32xf32, #tpu.memory_space<vmem>>, %arg5: memref<2x32xf32, #tpu.memory_space<vmem>>, %arg6: memref<2x32xf32, #tpu.memory_space<vmem>>) attributes {dimension_semantics = [], scalar_prefetch = 0 : i64, scratch_operands = 0 : i64, tpu.core_type = #tpu.core_type<tc>} {
    %c0 = arith.constant 0 : index
    %c0_0 = arith.constant 0 : index
    %0 = vector.load %arg1[%c0, %c0_0] : memref<2x32xf32, #tpu.memory_space<vmem>>, vector<2x32xf32>
    %c0_1 = arith.constant 0 : index
    %c0_2 = arith.constant 0 : index
    %c0_3 = arith.constant 0 : index
    %1 = vector.load %arg2[%c0_1, %c0_2, %c0_3] : memref<2x8x32xf32, #tpu.memory_space<vmem>>, vector<2x8x32xf32>
    %c0_4 = arith.constant 0 : index
    %c0_5 = arith.constant 0 : index
    %2 = vector.load %arg0[%c0_4, %c0_5] : memref<2x65xf32, #tpu.memory_space<vmem>>, vector<2x65xf32>
    %c0_6 = arith.constant 0 : index
    %c0_7 = arith.constant 0 : index
    %3 = vector.load %arg3[%c0_6, %c0_7] : memref<65x160xf32, #tpu.memory_space<vmem>>, vector<65x160xf32>
    %cst = arith.constant dense<0.000000e+00> : vector<2x160xf32>
    %4 = tpu.matmul %2, %3, %cst {dimension_numbers = #tpu.dot_dimension_numbers<[1], [0], [0], [1], [0, 0, 1, 1], [], []>} : vector<2x65xf32>, vector<65x160xf32>, vector<2x160xf32> -> vector<2x160xf32>
    %5 = vector.extract_strided_slice %4 {offsets = [0, 0], sizes = [2, 128], strides = [1, 1]} : vector<2x160xf32> to vector<2x128xf32>
    %6 = arith.negf %5 : vector<2x128xf32>
    %7 = math.exp %6 : vector<2x128xf32>
    %cst_8 = arith.constant 1.000000e+00 : f32
    %8 = vector.broadcast %cst_8 : f32 to vector<2x128xf32>
    %9 = arith.addf %8, %7 : vector<2x128xf32>
    %10 = arith.divf %8, %9 : vector<2x128xf32>
    %11 = vector.extract_strided_slice %4 {offsets = [0, 128], sizes = [2, 32], strides = [1, 1]} : vector<2x160xf32> to vector<2x32xf32>
    %12 = math.tanh %11 : vector<2x32xf32>
    %13 = vector.extract_strided_slice %10 {offsets = [0, 0], sizes = [2, 32], strides = [1, 1]} : vector<2x128xf32> to vector<2x32xf32>
    %14 = vector.extract_strided_slice %10 {offsets = [0, 32], sizes = [2, 32], strides = [1, 1]} : vector<2x128xf32> to vector<2x32xf32>
    %15 = vector.extract_strided_slice %10 {offsets = [0, 64], sizes = [2, 32], strides = [1, 1]} : vector<2x128xf32> to vector<2x32xf32>
    %16 = vector.extract_strided_slice %10 {offsets = [0, 96], sizes = [2, 32], strides = [1, 1]} : vector<2x128xf32> to vector<2x32xf32>
    %17 = arith.mulf %14, %0 : vector<2x32xf32>
    %18 = arith.mulf %13, %12 : vector<2x32xf32>
    %19 = arith.addf %17, %18 : vector<2x32xf32>
    %20 = math.tanh %19 : vector<2x32xf32>
    %21 = arith.mulf %15, %20 : vector<2x32xf32>
    %22 = arith.mulf %16, %20 : vector<2x32xf32>
    %c0_9 = arith.constant 0 : index
    %c0_10 = arith.constant 0 : index
    %23 = vector.load %arg4[%c0_9, %c0_10] : memref<104x32xf32, #tpu.memory_space<vmem>>, vector<32x32xf32>
    %c32 = arith.constant 32 : index
    %c0_11 = arith.constant 0 : index
    %24 = vector.load %arg4[%c32, %c0_11] : memref<104x32xf32, #tpu.memory_space<vmem>>, vector<32x32xf32>
    %c64 = arith.constant 64 : index
    %c0_12 = arith.constant 0 : index
    %25 = vector.load %arg4[%c64, %c0_12] : memref<104x32xf32, #tpu.memory_space<vmem>>, vector<32x32xf32>
    %c96 = arith.constant 96 : index
    %c0_13 = arith.constant 0 : index
    %26 = vector.load %arg4[%c96, %c0_13] : memref<104x32xf32, #tpu.memory_space<vmem>>, vector<1x32xf32>
    %c97 = arith.constant 97 : index
    %c0_14 = arith.constant 0 : index
    %27 = vector.load %arg4[%c97, %c0_14] : memref<104x32xf32, #tpu.memory_space<vmem>>, vector<1x32xf32>
    %c98 = arith.constant 98 : index
    %c0_15 = arith.constant 0 : index
    %28 = vector.load %arg4[%c98, %c0_15] : memref<104x32xf32, #tpu.memory_space<vmem>>, vector<1x32xf32>
    %c99 = arith.constant 99 : index
    %c0_16 = arith.constant 0 : index
    %29 = vector.load %arg4[%c99, %c0_16] : memref<104x32xf32, #tpu.memory_space<vmem>>, vector<1x32xf32>
    %c100 = arith.constant 100 : index
    %c0_17 = arith.constant 0 : index
    %30 = vector.load %arg4[%c100, %c0_17] : memref<104x32xf32, #tpu.memory_space<vmem>>, vector<1x32xf32>
    %c101 = arith.constant 101 : index
    %c0_18 = arith.constant 0 : index
    %31 = vector.load %arg4[%c101, %c0_18] : memref<104x32xf32, #tpu.memory_space<vmem>>, vector<1x8xf32>
    %c102 = arith.constant 102 : index
    %c0_19 = arith.constant 0 : index
    %32 = vector.load %arg4[%c102, %c0_19] : memref<104x32xf32, #tpu.memory_space<vmem>>, vector<1x1xf32>
    %cst_20 = arith.constant dense<0.000000e+00> : vector<2x32xf32>
    %33 = tpu.matmul %21, %23, %cst_20 {dimension_numbers = #tpu.dot_dimension_numbers<[1], [0], [0], [1], [0, 0, 1, 1], [], []>} : vector<2x32xf32>, vector<32x32xf32>, vector<2x32xf32> -> vector<2x32xf32>
    %34 = vector.broadcast %28 : vector<1x32xf32> to vector<2x32xf32>
    %35 = arith.addf %33, %34 : vector<2x32xf32>
    %cst_21 = arith.constant dense<0.000000e+00> : vector<2x32xf32>
    %36 = tpu.matmul %22, %24, %cst_21 {dimension_numbers = #tpu.dot_dimension_numbers<[1], [0], [0], [1], [0, 0, 1, 1], [], []>} : vector<2x32xf32>, vector<32x32xf32>, vector<2x32xf32> -> vector<2x32xf32>
    %37 = vector.broadcast %29 : vector<1x32xf32> to vector<2x32xf32>
    %38 = arith.addf %36, %37 : vector<2x32xf32>
    %39 = vector.shape_cast %1 : vector<2x8x32xf32> to vector<16x32xf32>
    %cst_22 = arith.constant dense<0.000000e+00> : vector<16x32xf32>
    %40 = tpu.matmul %39, %25, %cst_22 {dimension_numbers = #tpu.dot_dimension_numbers<[1], [0], [0], [1], [0, 0, 1, 1], [], []>} : vector<16x32xf32>, vector<32x32xf32>, vector<16x32xf32> -> vector<16x32xf32>
    %41 = vector.broadcast %30 : vector<1x32xf32> to vector<16x32xf32>
    %42 = arith.addf %40, %41 : vector<16x32xf32>
    %43 = math.tanh %42 : vector<16x32xf32>
    %44 = vector.shape_cast %43 : vector<16x32xf32> to vector<2x8x32xf32>
    %45 = vector.shape_cast %35 : vector<2x32xf32> to vector<2x1x32xf32>
    %46 = vector.broadcast %45 : vector<2x1x32xf32> to vector<2x8x32xf32>
    %47 = arith.addf %44, %46 : vector<2x8x32xf32>
    %48 = math.tanh %47 : vector<2x8x32xf32>
    %49 = arith.addf %35, %38 : vector<2x32xf32>
    %50 = math.tanh %49 : vector<2x32xf32>
    %51 = vector.shape_cast %26 : vector<1x32xf32> to vector<1x1x32xf32>
    %52 = vector.broadcast %51 : vector<1x1x32xf32> to vector<2x8x32xf32>
    %53 = arith.mulf %48, %52 : vector<2x8x32xf32>
    %cst_23 = arith.constant dense<0.000000e+00> : vector<2x8xf32>
    %54 = vector.multi_reduction <add>, %53, %cst_23 [2] : vector<2x8x32xf32> to vector<2x8xf32>
    %55 = vector.broadcast %31 : vector<1x8xf32> to vector<2x8xf32>
    %56 = arith.addf %54, %55 : vector<2x8xf32>
    %57 = vector.broadcast %27 : vector<1x32xf32> to vector<2x32xf32>
    %58 = arith.mulf %50, %57 : vector<2x32xf32>
    %cst_24 = arith.constant dense<0.000000e+00> : vector<2xf32>
    %59 = vector.multi_reduction <add>, %58, %cst_24 [1] : vector<2x32xf32> to vector<2xf32>
    %60 = vector.shape_cast %59 : vector<2xf32> to vector<2x1xf32>
    %61 = vector.broadcast %32 : vector<1x1xf32> to vector<2x1xf32>
    %62 = arith.addf %60, %61 : vector<2x1xf32>
    %cst_25 = arith.constant dense<0xFF800000> : vector<2xf32>
    %63 = vector.multi_reduction <maximumf>, %56, %cst_25 [1] : vector<2x8xf32> to vector<2xf32>
    %64 = vector.shape_cast %63 : vector<2xf32> to vector<2x1xf32>
    %65 = arith.maximumf %64, %62 : vector<2x1xf32>
    %66 = vector.broadcast %65 : vector<2x1xf32> to vector<2x8xf32>
    %67 = arith.subf %56, %66 : vector<2x8xf32>
    %68 = math.exp %67 : vector<2x8xf32>
    %69 = arith.subf %62, %65 : vector<2x1xf32>
    %70 = math.exp %69 : vector<2x1xf32>
    %cst_26 = arith.constant dense<0.000000e+00> : vector<2xf32>
    %71 = vector.multi_reduction <add>, %68, %cst_26 [1] : vector<2x8xf32> to vector<2xf32>
    %72 = vector.shape_cast %71 : vector<2xf32> to vector<2x1xf32>
    %73 = arith.addf %72, %70 : vector<2x1xf32>
    %74 = tpu.reciprocal %73 {approx = true} : vector<2x1xf32> -> vector<2x1xf32>
    %75 = arith.mulf %73, %74 : vector<2x1xf32>
    %cst_27 = arith.constant 2.000000e+00 : f32
    %76 = vector.broadcast %cst_27 : f32 to vector<2x1xf32>
    %77 = arith.subf %76, %75 : vector<2x1xf32>
    %78 = arith.mulf %74, %77 : vector<2x1xf32>
    %79 = vector.broadcast %78 : vector<2x1xf32> to vector<2x8xf32>
    %80 = arith.mulf %68, %79 : vector<2x8xf32>
    %81 = arith.mulf %70, %78 : vector<2x1xf32>
    %82 = vector.shape_cast %80 : vector<2x8xf32> to vector<2x8x1xf32>
    %83 = vector.broadcast %82 : vector<2x8x1xf32> to vector<2x8x32xf32>
    %84 = arith.mulf %83, %1 : vector<2x8x32xf32>
    %cst_28 = arith.constant dense<0.000000e+00> : vector<2x32xf32>
    %85 = vector.multi_reduction <add>, %84, %cst_28 [1] : vector<2x8x32xf32> to vector<2x32xf32>
    %86 = vector.broadcast %81 : vector<2x1xf32> to vector<2x32xf32>
    %87 = arith.mulf %86, %22 : vector<2x32xf32>
    %88 = arith.addf %85, %87 : vector<2x32xf32>
    %89 = vector.broadcast %81 : vector<2x1xf32> to vector<2x32xf32>
    %90 = arith.mulf %89, %22 : vector<2x32xf32>
    %cst_29 = arith.constant 1.000000e+00 : f32
    %91 = vector.broadcast %cst_29 : f32 to vector<2x1xf32>
    %92 = arith.subf %91, %81 : vector<2x1xf32>
    %93 = vector.broadcast %92 : vector<2x1xf32> to vector<2x32xf32>
    %94 = arith.mulf %93, %88 : vector<2x32xf32>
    %95 = arith.addf %90, %94 : vector<2x32xf32>
    %c0_30 = arith.constant 0 : index
    %c0_31 = arith.constant 0 : index
    %96 = vector.load %arg5[%c0_30, %c0_31] : memref<2x32xf32, #tpu.memory_space<vmem>>, vector<2x32xf32>
    tpu.vector_store %arg5[%c0_30, %c0_31], %21 {strides = array<i32>} : memref<2x32xf32, #tpu.memory_space<vmem>>, vector<2x32xf32>,
    %c0_32 = arith.constant 0 : index
    %c0_33 = arith.constant 0 : index
    %97 = vector.load %arg6[%c0_32, %c0_33] : memref<2x32xf32, #tpu.memory_space<vmem>>, vector<2x32xf32>
    tpu.vector_store %arg6[%c0_32, %c0_33], %95 {strides = array<i32>} : memref<2x32xf32, #tpu.memory_space<vmem>>, vector<2x32xf32>,
    return
  }
}

</mosaic_0001>

<bundles_post_ra>
// kernel: lstm_attentive_pallas.1
= control target key start
LH: loop header
LB: loop body
LE: loop exit
PB: predicated region body
PF: predicated region fallthrough
CT: control target
= control target key end

     0   :  { %12 = vsyncpa [#allocation3], 0  ;;  %v869_v7 = vmov 0.0   ;;  %s1113_s0 = inlined_call_operand.vmem [shape: f32[2,65], index: 0, kind: input, shape index: {}]   ;;  %s1114_s1 = inlined_call_operand.vmem [shape: f32[2,32], index: 1, kind: input, shape index: {}]   ;;  %s1115_s2 = inlined_call_operand.vmem [shape: f32[2,8,32], index: 2, kind: input, shape index: {}]   ;;  %s1116_s3 = inlined_call_operand.vmem [shape: f32[65,160], index: 3, kind: input, shape index: {}]   ;;  %s1117_s4 = inlined_call_operand.vmem [shape: f32[104,32], index: 4, kind: input, shape index: {}]   ;;  %s1118_s5 = inlined_call_operand.hbm [shape: f32[2,32], index: 5, kind: output, shape index: {0}]   ;;  %s1119_s6 = inlined_call_operand.hbm [shape: f32[2,32], index: 6, kind: output, shape index: {1}]  }
   0x1   :  { %v29_v0 = vld [vmem:[%s1116_s3 + $0x8] sm:$0xff]  ;;  %v31_v1 = vld [vmem:[%s1116_s3 + $0x18] sm:$0xff]  ;;  %v28_v2 = vld [vmem:[%s1116_s3] sm:$0xff]  ;;  %121 = vmatprep.mubr.f32.mxu0 %v869_v7 }
   0x2   :  { %v747_v3 = vpack.c.bf16 %v31_v1, %v29_v0  ;;  %v30_v4 = vld [vmem:[%s1116_s3 + $0x10] sm:$0xff]  ;;  %v33_v5 = vld [vmem:[%s1116_s3 + $0x28] sm:$0xff]  ;;  %v35_v6 = vld [vmem:[%s1116_s3 + $0x38] sm:$0xff] }
   0x3   :  { %v749_v8 = vpack.c.bf16 %v30_v4, %v28_v2  ;;  %v751_v9 = vpack.c.bf16 %v35_v6, %v33_v5  ;;  %v32_v10 = vld [vmem:[%s1116_s3 + $0x20] sm:$0xff]  ;;  %v34_v11 = vld [vmem:[%s1116_s3 + $0x30] sm:$0xff]  ;;  %v37_v12 = vld [vmem:[%s1116_s3 + $0x48] sm:$0xff] }
   0x4   :  { %748 = vmatprep.subr.bf16.mxu0 %v747_v3  ;;  %v39_v13 = vld [vmem:[%s1116_s3 + $0x58] sm:$0xff]  ;;  %v753_v14 = vpack.c.bf16 %v34_v11, %v32_v10  ;;  %v36_v16 = vld [vmem:[%s1116_s3 + $0x40] sm:$0xff]  ;;  %v38_v17 = vld [vmem:[%s1116_s3 + $0x50] sm:$0xff] }
   0x5   :  { %750 = vmatpush1.bf16.msra.mxu0 %v749_v8  ;;  %v755_v15 = vpack.c.bf16 %v39_v13, %v37_v12  ;;  %v41_v18 = vld [vmem:[%s1116_s3 + $0x68] sm:$0xff]  ;;  %v43_v19 = vld [vmem:[%s1116_s3 + $0x78] sm:$0xff]  ;;  %v24_v20 = vld [vmem:[%s1114_s1] sm:$0x3] }
   0x6   :  { %752 = vmatprep.subr.bf16.mxu0 %v751_v9 }
   0x7   :  { %13 = vsyncpa [#allocation5], 0  ;;  %s870_s27 = smov 32   ;;  %v757_v21 = vpack.c.bf16 %v38_v17, %v36_v16  ;;  %v759_v22 = vpack.c.bf16 %v43_v19, %v41_v18  ;;  %v40_v23 = vld [vmem:[%s1116_s3 + $0x60] sm:$0xff]  ;;  %v42_v24 = vld [vmem:[%s1116_s3 + $0x70] sm:$0xff]  ;;  %vm50_vm0 = vcmask 1040384   ;;  %v425_v9 = vlaneseq }
   0x8   :  { %136 = vrot.lane.b32.xlu0 %v24_v20, %s870_s27  ;;  %v761_v25 = vpack.c.bf16 %v42_v24, %v40_v23  ;;  %v45_v26 = vld [vmem:[%s1116_s3 + $0x88] sm:$0x1]  ;;  %v44_v27 = vld [vmem:[%s1116_s3 + $0x80] sm:$0x1]  ;;  %vm46_vm1 = vcmask 531456   ;;  %v158_v43 = vld [vmem:[%s1117_s4 + $0x10] sm:$0xff] }
   0x9   :  { %754 = vmatpush1.bf16.msra.mxu0 %v753_v14  ;;  %v27_v28 = vld [vmem:[%s1113_s0] sm:$0x3]  ;;  %v157_v42 = vld [vmem:[%s1117_s4 + $0x8] sm:$0xff]  ;;  %v871_v44 = vmov 0.0|0.0   ;;  %v159_v46 = vld [vmem:[%s1117_s4 + $0x18] sm:$0xff]  ;;  %vm872_vm2 = vmmov 0  }
   0xa   :  { %756 = vmatprep.subr.bf16.mxu0 %v755_v15  ;;  %v156_v41 = vld [vmem:[%s1117_s4] sm:$0xff]  ;;  %763 = vmatprep.subr.bf16.mxu1 %v871_v44  ;;  %v767_v47 = vpack.c.bf16 %v159_v46, %v158_v43  ;;  %s873_s19 = smov 64   ;;  %v161_v54 = vld [vmem:[%s1117_s4 + $0x28] sm:$0xff]  ;;  %vm182_vm3 = vcmask 261120   ;;  %vm488_vm4 = vcmask 254976   ;;  %v162_v56 = vld [vmem:[%s1117_s4 + $0x30] sm:$0xff] }
   0xb   :  { %v764_v45 = vpack.c.bf16 %v157_v42, %v156_v41  ;;  %722 = vmatprep.mubr.msk.f32.mxu1 %vm872_vm2, %v869_v7  ;;  %v160_v53 = vld [vmem:[%s1117_s4 + $0x20] sm:$0xff]  ;;  %v163_v57 = vld [vmem:[%s1117_s4 + $0x38] sm:$0xff]  ;;  %v165_v60 = vld [vmem:[%s1117_s4 + $0x48] sm:$0xff]  ;;  %v1045_v13 = vshrl.u32 %v425_v9, 7  ;;  %vm515_vm5 = vcmask 1041409   ;;  %vm518_vm6 = vcmask 58368  }
   0xc   :  { %v770_v55 = vpack.c.bf16 %v161_v54, %v160_v53  ;;  %v164_v59 = vld [vmem:[%s1117_s4 + $0x40] sm:$0xff]  ;;  %v773_v61 = vpack.c.bf16 %v163_v57, %v162_v56  ;;  %v166_v63 = vld [vmem:[%s1117_s4 + $0x50] sm:$0xff]  ;;  %v167_v0 = vld [vmem:[%s1117_s4 + $0x58] sm:$0xff]  ;;  %s877_s28 = smov [#allocation2]  }
   0xd   :  { %758 = vmatpush1.bf16.msra.mxu0 %v757_v21  ;;  %765 = vmatpush3.bf16.msra.mxu1 %v764_v45  ;;  %v775_v62 = vpack.c.bf16 %v165_v60, %v164_v59  ;;  %v779_v1 = vpack.c.bf16 %v167_v0, %v166_v63  ;;  %v1027_v2 = vld [vmem:[%s1115_s2] sm:$0xff]  ;;  %v1035_v4 = vld [vmem:[%s1115_s2 + $0x8] sm:$0xff]  ;;  %s661_s29 = sshll.u32 %s877_s28, 4  ;;  %s662_s29 = int_to_ptr.vmem [resolvable:$true] %s661_s29 }
   0xe   :  { %760 = vmatprep.subr.bf16.mxu0 %v759_v22  ;;  %766 = vmatprep.subr.bf16.mxu1 %v871_v44  ;;  %v687_v10 = vld [vmem:[%s1117_s4 + $0x62] ss:$0 sm:$0xff]  ;;  %v689_v11 = vld [vmem:[%s1117_s4 + $0x63] ss:$0 sm:$0xff]  ;;  %v691_v20 = vld [vmem:[%s1117_s4 + $0x64] ss:$0 sm:$0xff]  ;;  %p826_p1 = scmp.lt.s32.totalorder %s662_s29, %s662_s29 }
   0xf   :  { %v695_v43 = vld [vmem:[%s1117_s4 + $0x65] ss:$0 sm:$0xff]  ;;  %v697_v63 = vld [vmem:[%s1117_s4 + $0x66] ss:$0 sm:$0xff]  ;;  %s821_s30 = scalar_lea.vmem %s662_s29, 32 }
  0x10   :  { %p822_p0 = scmp.ne.s32.totalorder %s662_s29, %s821_s30  ;;  %p827_p2 = scmp.lt.s32.totalorder %s821_s30, %s821_s30 }
  0x11   :  { %762 = vmatpush1.bf16.msra.mxu0 %v761_v25  ;;  %768 = vmatpush3.bf16.msra.mxu1 %v767_v47 }
  0x12   :  { %683 = vmatprep.subr.msk.mxu0 %vm50_vm0, %v45_v26  ;;  %769 = vmatprep.subr.bf16.mxu1 %v871_v44  ;;  %p828_p3 = por %p827_p2, %p826_p1 }
  0x14   :  { %p829_p4 = pnand %p828_p3, %p822_p0 }
  0x15   :  { %684 = vmatpush1.msk.msra.mxu0 %vm50_vm0, %v44_v27 }
  0x16   :  { %685 = vmatmul.mubr.msk.f32.vlgmr.msra.gmra.mrb[0].mxu0 %vm46_vm1, %v27_v28 }
  0x7a   :  { %v137_v37 = vpop.permute.xlu0 %136 }
  0xe9   :  { %v123_v29 = vpop.f32.mrb[0].mxu0 }
  0xea   :  { %v686_v30 = vmul.f32 -1.442695, %v123_v29  ;;  %v125_v31 = vpop.f32.mrb[1].mxu0  ;;  %v1052_v29 = vsub.s32 0, %v1045_v13 }
  0xec   :  { %795 = vpow2.f32 %v686_v30 }
  0xed   :  { %797 = vtanh.f32 %v125_v31 }
  0xf6   :  { %v796_v32 = vpop.eup %795 }
  0xf7   :  { %v131_v33 = vadd.f32 1.0, %v796_v32  ;;  %v798_v34 = vpop.eup %797 }
  0xf9   :  { %799 = vrcp.f32 %v131_v33 }
 0x103   :  { %v800_v35 = vpop.eup %799 }
 0x104   :  { %v140_v36 = vmul.f32 %v800_v35, %v798_v34  ;;  %v139_v38 = vmul.f32 %v800_v35, %v137_v37 }
 0x106   :  { %142 = vrot.lane.b32.xlu0 %v140_v36, %s870_s27  ;;  %v694_v36 = vld [vmem:[%s1117_s4 + $0x60] ss:$0 sm:$0xff] }
 0x178   :  { %v143_v39 = vpop.permute.xlu0 %142 }
 0x179   :  { %v145_v40 = vadd.f32 %v143_v39, %v139_v38 }
 0x17b   :  { %801 = vtanh.f32 %v145_v40 }
 0x185   :  { %v802_v48 = vpop.eup %801 }
 0x186   :  { %148 = vrot.lane.b32.xlu1 %v802_v48, %s870_s27 }
 0x18a   :  { %152 = vrot.lane.b32.xlu1 %v802_v48, %s873_s19 }
 0x1f8   :  { %v149_v49 = vpop.permute.xlu1 %148 }
 0x1f9   :  { %v151_v50 = vmul.f32 %v800_v35, %v149_v49 }
 0x1fb   :  { %180 = vrot.lane.b32.xlu0 %v151_v50, %s873_s19 }
 0x1fc   :  { %v153_v51 = vpop.permute.xlu1 %152 }
 0x1fd   :  { %v992_v52 = vmul.f32 %v800_v35, %v153_v51  ;;  %v696_v51 = vld [vmem:[%s1117_s4 + $0x61] ss:$0 sm:$0xff]  ;;  %s876_s4 = smov 96  }
 0x1ff   :  { %260 = vrot.lane.b32.xlu1 %v992_v52, %s870_s27 }
 0x26d   :  { %v181_v58 = vpop.permute.xlu0 %180 }
 0x26e   :  { %723 = vmatmul.mubr.msk.f32.vlgmr.msra.gmra.mrb[0].mxu1 %vm182_vm3, %v181_v58  ;;  %649 = vst.msk [vmem:[#allocation2] sm:$0x3] %vm488_vm4, %v181_v58 }
 0x26f   :  { %771 = vmatpush3.bf16.msra.mxu1 %v770_v55  ;;  %733 = vmatprep.mubr.msk.f32.mxu1 %vm872_vm2, %v869_v7  ;;  %v874_v7 = vmov 1966171168   ;;  %v506_v55 = vand.u32 127, %v425_v9 }
 0x270   :  { %772 = vmatprep.subr.bf16.mxu1 %v871_v44  ;;  %v423_v8 = vunpack.c.l.s4 %v874_v7  ;;  %v875_v44 = vmov 0   ;;  %v533_v7 = vsub.s32 1, %v1045_v13 }
 0x271   :  { %v261_v3 = vpop.permute.xlu1 %260  ;;  %794 = vset.pattern.permute.xlu0 %v875_v44  ;;  %793 = vset.pattern.permute.xlu1 %v875_v44  ;;  %v509_v56 = vsub.s32 %v506_v55, %v1045_v13 }
 0x272   :  { %v424_v12 = vunpack.c.0.s8 %v423_v8 }
 0x273   :  { %774 = vmatpush3.bf16.msra.mxu1 %v773_v61 }
 0x274   :  { %776 = vmatprep.subr.bf16.mxu1 %v775_v62  ;;  %v427_v19 = vsub.s32 %v424_v12, %v1045_v13 }
 0x276   :  { %734 = vmatmul.mubr.msk.f32.vlgmr.msra.gmra.mrb[2].mxu1 %vm182_vm3, %v261_v3 }
 0x277   :  { %778 = vmatpush3.bf16.msra.mxu1 %v775_v62  ;;  %744 = vmatprep.mubr.msk.f32.mxu1 %vm182_vm3, %v1027_v2 }
 0x278   :  { %780 = vmatprep.subr.bf16.mxu1 %v779_v1 }
 0x27b   :  { %782 = vmatpush3.bf16.msra.mxu1 %v779_v1 }
 0x27e   :  { %745 = vmatmul.mubr.msk.f32.vlgmr.msra.gmra.mrb[4].mxu1 %vm182_vm3, %v1035_v4 }
 0x341   :  { %v251_v5 = vpop.f32.mrb[0].mxu1 }
 0x342   :  { %v724_v6 = vpop.f32.mrb[1].mxu1  ;;  %v252_v15 = vadd.f32 %v687_v10, %v251_v5 }
 0x344   :  { %v428_v21 = vrot.slane %v252_v15, %v427_v19 }
 0x346   :  { %v429_v26 = vcombine.high %v428_v21, %v428_v21  ;;  %v436_v28 = vrot.slane %v428_v21, %v427_v19 }
 0x348   :  { %v443_v27 = vrot.slane %v429_v26, %v427_v19  ;;  %v447_v32 = vrot.slane %v436_v28, %v1052_v29 }
 0x349   :  { %v330_v14 = vpop.f32.mrb[2].mxu1 }
 0x34a   :  { %v331_v16 = vadd.f32 %v689_v11, %v330_v14  ;;  %v735_v17 = vpop.f32.mrb[3].mxu1  ;;  %v451_v30 = vrot.slane %v443_v27, %v1052_v29 }
 0x34c   :  { %v458_v18 = vadd.f32 %v331_v16, %v252_v15 }
 0x351   :  { %v746_v22 = vpop.f32.mrb[4].mxu1 }
 0x352   :  { %v416_v23 = vadd.f32 %v746_v22, %v691_v20  ;;  %v410_v24 = vpop.f32.mrb[5].mxu1 }
 0x353   :  { %v411_v25 = vadd.f32 %v691_v20, %v410_v24 }
 0x354   :  { %803 = vtanh.f32 %v416_v23 }
 0x355   :  { %805 = vtanh.f32 %v411_v25 }
 0x35e   :  { %v804_v31 = vpop.eup %803 }
 0x35f   :  { %v806_v33 = vpop.eup %805  ;;  %v455_v34 = vadd.f32 %v804_v31, %v451_v30 }
 0x360   :  { %v454_v35 = vadd.f32 %v806_v33, %v447_v32 }
 0x361   :  { %807 = vtanh.f32 %v455_v34 }
 0x362   :  { %809 = vtanh.f32 %v454_v35 }
 0x363   :  { %811 = vtanh.f32 %v458_v18 }
 0x36b   :  { %v808_v37 = vpop.eup %807 }
 0x36c   :  { %v810_v38 = vpop.eup %809  ;;  %v465_v39 = vmul.f32 %v808_v37, %v694_v36 }
 0x36d   :  { %v464_v40 = vmul.f32 %v810_v38, %v694_v36  ;;  %v812_v50 = vpop.eup %811 }
 0x36e   :  { %v469_v41 = vsel %vm182_vm3, %v465_v39, 0.0  ;;  %v487_v53 = vmul.f32 %v812_v50, %v696_v51 }
 0x36f   :  { %470 = vadd.xlane.f32.xlu1 %v469_v41  ;;  %v466_v42 = vsel %vm182_vm3, %v464_v40, 0.0 }
 0x370   :  { %467 = vadd.xlane.f32.xlu0 %v466_v42  ;;  %v489_v54 = vsel %vm488_vm4, %v487_v53, 0.0 }
 0x386   :  { %478 = vbcast.lane.b32.xlu0 %v695_v43, 256 }
 0x3fc   :  { %v471_v46 = vpop.xlane.xlu1 %470 }
 0x3fd   :  { %v468_v45 = vpop.xlane.xlu0 %467 }
 0x401   :  { %v479_v47 = vpop.permute.xlu0 %478 }
 0x402   :  { %v481_v48 = vadd.f32 %v479_v47, %v468_v45  ;;  %v482_v49 = vadd.f32 %v479_v47, %v471_v46 }
 0x404   :  { %503 = vperm.xlu0 %794, %v482_v49   ;;  %500 = vperm.xlu1 %793, %v481_v48  }
 0x428   :  { %490 = vadd.xlane.f32.xlu1 %v489_v54 }
 0x483   :  { %v504_v57 = vpop.permute.xlu0 %503  ;;  %v501_v58 = vpop.permute.xlu1 %500 }
 0x484   :  { %v514_v59 = vrot.slane %v504_v57, %v509_v56  ;;  %v510_v60 = vrot.slane %v501_v58, %v509_v56 }
 0x486   :  { %v516_v61 = vsel %vm515_vm5, %v514_v59, %v510_v60 }
 0x487   :  { %v519_v62 = vsel %vm518_vm6, %v516_v61, -inf }
 0x488   :  { %520 = vmax.xlane.f32.xlu0 %v519_v62 }
 0x4b5   :  { %v491_v0 = vpop.xlane.xlu1 %490 }
 0x4b6   :  { %v496_v1 = vadd.f32 %v697_v63, %v491_v0 }
 0x515   :  { %v521_v3 = vpop.xlane.xlu0 %520 }
 0x516   :  { %v522_v5 = vmax.f32 %v521_v3, %v496_v1 }
 0x518   :  { %v543_v6 = vsub.f32 %v496_v1, %v522_v5  ;;  %525 = vperm.xlu1 %793, %v522_v5  }
 0x51a   :  { %v544_v23 = vmul.f32 1.442695, %v543_v6 }
 0x597   :  { %v526_v8 = vpop.permute.xlu1 %525 }
 0x598   :  { %v530_v9 = vrot.slane %v526_v8, %v1052_v29  ;;  %v534_v10 = vrot.slane %v526_v8, %v533_v7 }
 0x59a   :  { %v537_v11 = vsub.f32 %v481_v48, %v530_v9  ;;  %v538_v12 = vsub.f32 %v482_v49, %v534_v10 }
 0x59c   :  { %v539_v14 = vmul.f32 1.442695, %v537_v11  ;;  %v541_v15 = vmul.f32 1.442695, %v538_v12 }
 0x59e   :  { %813 = vpow2.f32 %v539_v14 }
 0x59f   :  { %815 = vpow2.f32 %v541_v15 }
 0x5a0   :  { %817 = vpow2.f32 %v544_v23 }
 0x5a8   :  { %v814_v16 = vpop.eup %813 }
 0x5a9   :  { %v816_v17 = vpop.eup %815  ;;  %549 = vperm.xlu0 %794, %v814_v16  }
 0x5aa   :  { %552 = vperm.xlu1 %793, %v816_v17   ;;  %v818_v24 = vpop.eup %817 }
 0x628   :  { %v550_v18 = vpop.permute.xlu0 %549 }
 0x629   :  { %v553_v19 = vpop.permute.xlu1 %552  ;;  %v557_v20 = vrot.slane %v550_v18, %v509_v56 }
 0x62a   :  { %v561_v21 = vrot.slane %v553_v19, %v509_v56 }
 0x62c   :  { %v562_v13 = vsel %vm515_vm5, %v561_v21, %v557_v20 }
 0x62d   :  { %v564_v22 = vsel %vm518_vm6, %v562_v13, 0.0 }
 0x62e   :  { %565 = vadd.xlane.f32.xlu1 %v564_v22 }
 0x6bb   :  { %v566_v25 = vpop.xlane.xlu1 %565 }
 0x6bc   :  { %v567_v26 = vadd.f32 %v818_v24, %v566_v25 }
 0x6be   :  { %819 = vrcp.f32 %v567_v26 }
 0x6c8   :  { %v820_v27 = vpop.eup %819 }
 0x6c9   :  { %v569_v28 = vmul.f32 %v820_v27, %v567_v26 }
 0x6cb   :  { %v570_v30 = vsub.f32 2.0, %v569_v28 }
 0x6cd   :  { %v571_v31 = vmul.f32 %v820_v27, %v570_v30 }
 0x6cf   :  { %574 = vperm.xlu0 %794, %v571_v31   ;;  %v588_v32 = vmul.f32 %v818_v24, %v571_v31 }
 0x6d1   :  { %v631_v40 = vsub.f32 1.0, %v588_v32 }
 0x6d3   :  { %617 = vperm.xlu0 %794, %v588_v32  }
 0x74e   :  { %v575_v33 = vpop.permute.xlu0 %574 }
 0x74f   :  { %v583_v34 = vrot.slane %v575_v33, %v533_v7  ;;  %v579_v35 = vrot.slane %v575_v33, %v1052_v29 }
 0x751   :  { %v587_v36 = vmul.f32 %v816_v17, %v583_v34  ;;  %v586_v37 = vmul.f32 %v814_v16, %v579_v35 }
 0x752   :  { %v618_v38 = vpop.permute.xlu0 %617 }
 0x753   :  { %596 = vperm.xlu0 %794, %v587_v36   ;;  %v620_v39 = vmul.f32 %v618_v38, %v992_v52 }
 0x755   :  { %v622_v41 = vrot.slane %v620_v39, 1 }
 0x757   :  { %591 = vperm.xlu0 %794, %v586_v37  }
 0x75b   :  { %634 = vperm.xlu0 %794, %v631_v40  }
 0x75f   :  { %625 = vrot.lane.b32.xlu0 %v622_v41, %s870_s27 }
 0x763   :  { %623 = vrot.lane.b32.xlu0 %v620_v39, %s870_s27 }
 0x7d2   :  { %v597_v42 = vpop.permute.xlu0 %596 }
 0x7d3   :  { %v600_v43 = vmul.f32 %v597_v42, %v1035_v4 }
 0x7d5   :  { %v608_v44 = vsel %vm182_vm3, %v600_v43, 0.0 }
 0x7d6   :  { %v609_v29 = vrot.slane %v608_v44, 4  ;;  %v592_v45 = vpop.permute.xlu0 %591 }
 0x7d7   :  { %v599_v46 = vmul.f32 %v592_v45, %v1027_v2 }
 0x7d8   :  { %v610_v47 = vadd.f32 %v609_v29, %v608_v44 }
 0x7d9   :  { %v601_v48 = vsel %vm182_vm3, %v599_v46, 0.0 }
 0x7da   :  { %v611_v52 = vrot.slane %v610_v47, 2  ;;  %v602_v49 = vrot.slane %v601_v48, 4  ;;  %v635_v50 = vpop.permute.xlu0 %634 }
 0x7dc   :  { %v603_v51 = vadd.f32 %v602_v49, %v601_v48  ;;  %v612_v53 = vadd.f32 %v611_v52, %v610_v47 }
 0x7de   :  { %v604_v54 = vrot.slane %v603_v51, 2  ;;  %v613_v55 = vrot.slane %v612_v53, 1  ;;  %v626_v56 = vpop.permute.xlu0 %625 }
 0x7e0   :  { %v614_v57 = vadd.f32 %v613_v55, %v612_v53  ;;  %v605_v58 = vadd.f32 %v604_v54, %v603_v51 }
 0x7e2   :  { %v630_v4 = vadd.f32 %v626_v56, %v614_v57  ;;  %v606_v59 = vrot.slane %v605_v58, 1  ;;  %v624_v61 = vpop.permute.xlu0 %623 }
 0x7e4   :  { %v607_v60 = vadd.f32 %v606_v59, %v605_v58  ;;  %v639_v62 = vrot.slane %v630_v4, 7 }
 0x7e6   :  { %v629_v63 = vadd.f32 %v624_v61, %v607_v60 }
 0x7e8   :  { %v640_v2 = vsel %vm515_vm5, %v639_v62, %v629_v63 }
 0x7e9   :  { %v642_v0 = vmul.f32 %v640_v2, %v635_v50 }
 0x7eb   :  { %644 = vrot.lane.b32.xlu0 %v642_v0, %s876_s4 }
 0x7ec   :  { %832 = shalt.err (!%p829_p4)
}
 0x7ed   :  { %s833_s8 = scalar_lea.hbm %s1118_s5, 32 }
 0x7ee   :  { %p834_p5 = scmp.ne.s32.totalorder %s1118_s5, %s833_s8  ;;  %p837_p6 = scmp.lt.u32.totalorder %s833_s8, %s1118_s5 }
 0x7f0   :  { %p839_p7 = pnand %p837_p6, %p834_p5 }
 0x7f2   :  { %842 = shalt.err (!%p839_p7)
}
 0x7f3   :  { %664 = dma.vmem_to_hbm [thread:$0]  %s662_s29, 32, %s1118_s5, [#allocation3]  }
 0x7f4   :  { %s878_s13 = smov [#allocation4]  }
 0x7f5   :  { %s671_s14 = sshll.u32 %s878_s13, 4  ;;  %s672_s14 = int_to_ptr.vmem [resolvable:$true] %s671_s14 }
 0x7f6   :  { %s843_s15 = scalar_lea.vmem %s672_s14, 32  ;;  %p848_p9 = scmp.lt.s32.totalorder %s672_s14, %s672_s14 }
 0x7f7   :  { %p844_p8 = scmp.ne.s32.totalorder %s672_s14, %s843_s15  ;;  %p849_p10 = scmp.lt.s32.totalorder %s843_s15, %s843_s15 }
 0x7f9   :  { %p850_p11 = por %p849_p10, %p848_p9 }
 0x7fb   :  { %p851_p12 = pnand %p850_p11, %p844_p8 }
 0x85d   :  { %v645_v1 = vpop.permute.xlu0 %644 }
 0x85e   :  { %v647_v3 = vadd.f32 %v645_v1, %v620_v39 }
 0x860   :  { %651 = vrot.lane.b32.xlu0 %v647_v3, %s870_s27 }
 0x8d2   :  { %v652_v5 = vpop.permute.xlu0 %651 }
 0x8d3   :  { %654 = vst.msk [vmem:[#allocation4] sm:$0x3] %vm488_vm4, %v652_v5 }
 0x8d4   :  { %854 = shalt.err (!%p851_p12)
}
 0x8d5   :  { %s855_s5 = scalar_lea.hbm %s1119_s6, 32 }
 0x8d6   :  { %p856_p13 = scmp.ne.s32.totalorder %s1119_s6, %s855_s5  ;;  %p859_p0 = scmp.lt.u32.totalorder %s855_s5, %s1119_s6 }
 0x8d8   :  { %p861_p1 = pnand %p859_p0, %p856_p13 }
 0x8da   :  { %864 = shalt.err (!%p861_p1)
}
 0x8db   :  { %674 = dma.vmem_to_hbm [thread:$0]  %s672_s14, 32, %s1119_s6, [#allocation5]  }
 0x8dc   :  { %865 = dma.done.wait [#allocation3], 32  }
 0x8dd   :  { %866 = vsyncadd [#allocation3], 4294967264 }
 0x8de   :  { %867 = dma.done.wait [#allocation5], 32  }
 0x8df   :  { %868 = vsyncadd [#allocation5], 4294967264 }
 0x8e0   :  { %681 = vsyncpa [#allocation3], 1 }
 0x8e1   :  { %682 = vsyncpa [#allocation5], 1 }

</bundles_post_ra>
